<compile_context>
chip_gen: v6e
topology: v6e:2x2x1
jax: 0.10.0
libtpu: 0.0.40
codegen_flags: <defaults>
</compile_context>

<pallas_src>
import math
import functools

import jax
import jax.numpy as jnp
from jax import lax
from jax.experimental import pallas as pl
from jax.experimental.pallas import tpu as pltpu


def _block_conv_kernel(x_ref, w_ref, p_ref, out_ref, *, K, L_out, C_out_real,
                       eps, fused_im2col, approximate_gelu):
    # x_ref:   (NB, L_pad, C_in)      compute dtype (bf16 or f32)
    # w_ref:   (K, C_in, C_out_p)     compute dtype (zero-padded output lanes)
    # p_ref:   (3, C_out_p)           f32 rows: bias, gamma, beta (zero-padded)
    # out_ref: (NB, L_out, C_out_p)
    NB, _, C_in = x_ref.shape
    C_out_p = out_ref.shape[-1]
    M = NB * L_out

    x = x_ref[...]

    # ---- Conv1d (stride=1) on the MXU, f32 accumulation ----
    if fused_im2col:
        # C_in % 128 == 0: tap concat is lane-tile aligned, one wide matmul.
        taps = [x[:, k:k + L_out, :].reshape(M, C_in) for k in range(K)]
        patch = jnp.concatenate(taps, axis=-1)                   # (M, K*C_in)
        w2d = w_ref[...].reshape(K * C_in, C_out_p)              # free (C_in%8==0)
        acc = jnp.dot(patch, w2d, preferred_element_type=jnp.float32)
    else:
        # Small/unaligned C_in: accumulate K matmuls, no lane concat, no
        # (NB*L_out) relayout (reshape is free: NB==1 or L_out%8==0).
        acc = None
        for k in range(K):
            tap = x[:, k:k + L_out, :].reshape(M, C_in)
            d = jnp.dot(tap, w_ref[k], preferred_element_type=jnp.float32)
            acc = d if acc is None else acc + d

    bias = p_ref[0, :].astype(jnp.float32)
    acc = acc + bias[None, :]
    acc = acc.reshape(NB, L_out, C_out_p)                        # free reshape

    # ---- Dropout1d: identity in eval mode ----

    # ---- GroupNorm(num_groups=1): per-sample stats over (L_out, C_out_real).
    # Two-pass (mean, then centered sum of squares) in f32; padded output
    # lanes carry exact zeros (zero weights + zero bias) and are masked out of
    # the variance so both moments are exact w.r.t. the real channel count.
    n_inv = 1.0 / float(L_out * C_out_real)
    s1 = jnp.sum(jnp.sum(acc, axis=2, keepdims=True), axis=1, keepdims=True)
    mean = s1 * n_inv                                            # (NB, 1, 1)
    lane = lax.broadcasted_iota(jnp.int32, (1, 1, C_out_p), 2)
    centered = jnp.where(lane < C_out_real, acc - mean, 0.0)
    s2 = jnp.sum(jnp.sum(centered * centered, axis=2, keepdims=True),
                 axis=1, keepdims=True)
    inv = lax.rsqrt(s2 * n_inv + eps)

    gamma = p_ref[1, :].astype(jnp.float32)[None, None, :]
    beta = p_ref[2, :].astype(jnp.float32)[None, None, :]
    scale = inv * gamma                                          # gamma folded in
    shift = beta - mean * scale
    y = acc * scale + shift

    # ---- GELU ----
    if approximate_gelu:
        y = jax.nn.gelu(y, approximate=True)     # tanh -> EUP slot
    else:
        # exact erf-based GELU (torch.nn.GELU default)
        y = 0.5 * y * (1.0 + lax.erf(y * (1.0 / math.sqrt(2.0))))

    out_ref[...] = y.astype(out_ref.dtype)                       # lane-dense store


def _pick_block_batch(n, l_out, est_fn, budget, target_m):
    """Largest divisor NB of n with NB*l_out <= target_m and est(NB) <= budget,
    preferring an even grid-step count (v7x megacore), then >= 2 steps."""
    if l_out % 8:
        return 1   # keep the in-kernel (NB*L_out, .) reshapes layout-free
    divisors = [d for d in range(1, n + 1) if n % d == 0]
    fits = [d for d in divisors
            if d * l_out <= target_m and est_fn(d) <= budget] or [1]
    even_steps = [d for d in fits if (n // d) % 2 == 0]
    if even_steps:
        return max(even_steps)
    multi = [d for d in fits if n // d >= 2]
    return max(multi) if multi else max(fits)


def block_conv_forward(x, weight, bias, gamma, beta, *, kernel_size=3, stride=1,
                       padding=1, eps=1e-5, compute_dtype=jnp.bfloat16,
                       approximate_gelu=False, block_batch=None,
                       lane_dense_output=False):
    """x: (N, C_in, L) f32; weight: (C_out, C_in, K); bias/gamma/beta: (C_out,)."""
    assert stride == 1, "kernel implements stride=1 (module default)"
    N, C_in, L = x.shape
    C_out, C_in_w, K = weight.shape
    assert C_in_w == C_in and K == kernel_size
    L_out = L + 2 * padding - K + 1
    assert L_out > 0, "invalid (L, kernel_size, padding) combination"
    L_pad = L + 2 * padding

    C_out_p = ((C_out + 127) // 128) * 128           # lane-dense (unmasked vst)
    # TODO(synk): on v6e/v7x with C_out >= 128 a 256-multiple pad better fills
    # the 2x256^2 MXU; kept at 128 (v5e-native, and small C_out here).

    fused_im2col = (C_in % 128 == 0)
    isz_c = jnp.dtype(compute_dtype).itemsize
    isz_out = jnp.dtype(x.dtype).itemsize

    # ---- generation-aware VMEM budget ----
    try:
        vmem_cap = int(pltpu.get_tpu_info().vmem_capacity_bytes)
    except Exception:
        vmem_cap = 64 * 1024 * 1024                  # conservative: v7x per-TC
    budget = int(0.8 * vmem_cap)
    target_m = 2048 if budget >= 64 * 1024 * 1024 else 1024

    def est(nb):
        taps = K * nb * L_out * C_in * isz_c                 # shifted tap copies
        patch = taps if fused_im2col else 0                  # im2col concat buffer
        return (2 * nb * L_pad * C_in * isz_c                # x double-buffer
                + 2 * nb * L_out * C_out_p * isz_out         # out double-buffer
                + 2 * K * C_in * C_out_p * isz_c             # weight (2 bufs)
                + 2 * 3 * C_out_p * 4                        # params (2 bufs)
                + taps + patch
                + 3 * nb * L_out * C_out_p * 4)              # f32 acc/centered/y

    if block_batch is not None:
        NB = block_batch
        assert N % NB == 0, "block_batch must divide batch size"
        assert NB == 1 or L_out % 8 == 0, "NB>1 requires L_out % 8 == 0"
    else:
        NB = _pick_block_batch(N, L_out, est, budget, target_m)

    # Always set the scoped limit (v5e default is 16 MiB); never exceed ~80% of
    # physical VMEM — if the tile doesn't fit, NB was already shrunk above.
    vmem_limit = min(budget, max(int(1.5 * est(NB)), 32 * 1024 * 1024))

    # ---- one-time relayout / padding in plain JAX (glue) ----
    x_nlc = jnp.transpose(x, (0, 2, 1))                       # NCL -> NLC
    x_pad = jnp.pad(x_nlc, ((0, 0), (padding, padding), (0, 0))).astype(compute_dtype)
    # weight: (C_out, C_in, K) -> (K, C_in, C_out_p), zero-padded output lanes
    w = jnp.transpose(weight, (2, 1, 0))
    w = jnp.pad(w, ((0, 0), (0, 0), (0, C_out_p - C_out))).astype(compute_dtype)
    # bias / gamma / beta -> one (3, C_out_p) slab (zero-padded lanes), f32
    params = jnp.pad(jnp.stack([bias, gamma, beta]).astype(jnp.float32),
                     ((0, 0), (0, C_out_p - C_out)))

    kernel = functools.partial(_block_conv_kernel, K=K, L_out=L_out,
                               C_out_real=C_out, eps=eps,
                               fused_im2col=fused_im2col,
                               approximate_gelu=approximate_gelu)

    out = pl.pallas_call(
        kernel,
        out_shape=jax.ShapeDtypeStruct((N, L_out, C_out_p), x.dtype),
        grid_spec=pltpu.PrefetchScalarGridSpec(
            num_scalar_prefetch=0,
            grid=(N // NB,),
            in_specs=[
                pl.BlockSpec((NB, L_pad, C_in), lambda n: (n, 0, 0)),
                pl.BlockSpec((K, C_in, C_out_p), lambda n: (0, 0, 0)),
                pl.BlockSpec((3, C_out_p), lambda n: (0, 0)),
            ],
            out_specs=pl.BlockSpec((NB, L_out, C_out_p), lambda n: (n, 0, 0)),
        ),
        compiler_params=pltpu.CompilerParams(
            dimension_semantics=("parallel",),
            vmem_limit_bytes=vmem_limit),
    )(x_pad, w, params)

    if lane_dense_output:
        return out                                   # (N, L_out, C_out_p)
    # Back to PyTorch NCL layout, drop lane padding (wrapper glue).
    return jnp.transpose(out[:, :, :C_out], (0, 2, 1))


def _reference(x, weight, bias, gamma, beta, padding=1, eps=1e-5):
    # Pure-JAX reference (Conv1d + GroupNorm(1) + exact GELU), eval-mode dropout.
    y = lax.conv_general_dilated(
        x, weight, window_strides=(1,), padding=[(padding, padding)],
        dimension_numbers=("NCH", "OIH", "NCH"))
    y = y + bias[None, :, None]
    mean = jnp.mean(y, axis=(1, 2), keepdims=True)
    var = jnp.mean((y - mean) ** 2, axis=(1, 2), keepdims=True)
    y = (y - mean) * lax.rsqrt(var + eps)
    y = y * gamma[None, :, None] + beta[None, :, None]
    return 0.5 * y * (1.0 + lax.erf(y / math.sqrt(2.0)))


if __name__ == "__main__":
    key = jax.random.PRNGKey(0)

    configs = [
        dict(N=2, C_in=4, C_out=8, L=16, K=3, padding=1),   # NB=1, 2 grid steps
        dict(N=8, C_in=4, C_out=8, L=16, K=3, padding=1),   # exercises NB>1 batching
    ]
    for cfg in configs:
        N, C_in, C_out, L, K, padding = (cfg[k] for k in
                                         ("N", "C_in", "C_out", "L", "K", "padding"))
        key, kx, kw, kb, kg, kbe = jax.random.split(key, 6)
        x = jax.random.normal(kx, (N, C_in, L), dtype=jnp.float32)

        bound = 1.0 / math.sqrt(C_in * K)
        weight = jax.random.uniform(kw, (C_out, C_in, K), jnp.float32, -bound, bound)
        bias = jax.random.uniform(kb, (C_out,), jnp.float32, -bound, bound)
        gamma = jnp.ones((C_out,), jnp.float32) + 0.1 * jax.random.normal(kg, (C_out,))
        beta = 0.1 * jax.random.normal(kbe, (C_out,))

        ref = _reference(x, weight, bias, gamma, beta, padding=padding)

        # f32 compute path: strict check against the reference.
        out32 = block_conv_forward(x, weight, bias, gamma, beta,
                                   kernel_size=K, stride=1, padding=padding,
                                   compute_dtype=jnp.float32)
        out32 = jax.block_until_ready(out32)
        assert out32.shape == ref.shape == (N, C_out, L)
        err32 = float(jnp.max(jnp.abs(out32 - ref)))
        assert err32 < 1e-3, f"f32 max err {err32}"

        # default bf16 MXU path (f32 accumulation + f32 post-matmul math).
        outbf = block_conv_forward(x, weight, bias, gamma, beta,
                                   kernel_size=K, stride=1, padding=padding)
        outbf = jax.block_until_ready(outbf)
        errbf = float(jnp.max(jnp.abs(outbf - ref)))
        assert errbf < 5e-2, f"bf16 max err {errbf}"

    print("KERNEL_OK")
</pallas_src>

<mosaic_0001>
module attributes {stable_mosaic.version = 11 : i64} {
  func.func @_block_conv_kernel(%arg0: i32, %arg1: memref<1x18x4xf32, #tpu.memory_space<vmem>>, %arg2: memref<3x4x128xf32, #tpu.memory_space<vmem>>, %arg3: memref<3x128xf32, #tpu.memory_space<vmem>>, %arg4: memref<1x16x128xf32, #tpu.memory_space<vmem>>) attributes {dimension_semantics = [#tpu.dimension_semantics<parallel>], iteration_bounds = array<i64: 2>, scalar_prefetch = 0 : i64, scratch_operands = 0 : i64, tpu.core_type = #tpu.core_type<tc>, window_params = [{transform_indices = @transform_0, window_bounds = array<i64: 1, 18, 4>}, {pipeline_mode = #tpu.pipeline_mode<synchronous>, transform_indices = @transform_1, window_bounds = array<i64: 3, 4, 128>}, {pipeline_mode = #tpu.pipeline_mode<synchronous>, transform_indices = @transform_2, window_bounds = array<i64: 3, 128>}, {transform_indices = @transform_3, window_bounds = array<i64: 1, 16, 128>}]} {
    %c0 = arith.constant 0 : index
    %c0_0 = arith.constant 0 : index
    %c0_1 = arith.constant 0 : index
    %0 = vector.load %arg1[%c0, %c0_0, %c0_1] : memref<1x18x4xf32, #tpu.memory_space<vmem>>, vector<1x18x4xf32>
    %1 = vector.extract_strided_slice %0 {offsets = [0, 0, 0], sizes = [1, 16, 4], strides = [1, 1, 1]} : vector<1x18x4xf32> to vector<1x16x4xf32>
    %2 = vector.shape_cast %1 : vector<1x16x4xf32> to vector<16x4xf32>
    %c0_2 = arith.constant 0 : index
    %c0_3 = arith.constant 0 : index
    %c0_4 = arith.constant 0 : index
    %3 = vector.load %arg2[%c0_2, %c0_3, %c0_4] : memref<3x4x128xf32, #tpu.memory_space<vmem>>, vector<1x4x128xf32>
    %4 = vector.shape_cast %3 : vector<1x4x128xf32> to vector<4x128xf32>
    %cst = arith.constant dense<0.000000e+00> : vector<16x128xf32>
    %5 = tpu.matmul %2, %4, %cst {dimension_numbers = #tpu.dot_dimension_numbers<[1], [0], [0], [1], [0, 0, 1, 1], [], []>} : vector<16x4xf32>, vector<4x128xf32>, vector<16x128xf32> -> vector<16x128xf32>
    %6 = vector.extract_strided_slice %0 {offsets = [0, 1, 0], sizes = [1, 16, 4], strides = [1, 1, 1]} : vector<1x18x4xf32> to vector<1x16x4xf32>
    %7 = vector.shape_cast %6 : vector<1x16x4xf32> to vector<16x4xf32>
    %c1 = arith.constant 1 : index
    %c0_5 = arith.constant 0 : index
    %c0_6 = arith.constant 0 : index
    %8 = vector.load %arg2[%c1, %c0_5, %c0_6] : memref<3x4x128xf32, #tpu.memory_space<vmem>>, vector<1x4x128xf32>
    %9 = vector.shape_cast %8 : vector<1x4x128xf32> to vector<4x128xf32>
    %cst_7 = arith.constant dense<0.000000e+00> : vector<16x128xf32>
    %10 = tpu.matmul %7, %9, %cst_7 {dimension_numbers = #tpu.dot_dimension_numbers<[1], [0], [0], [1], [0, 0, 1, 1], [], []>} : vector<16x4xf32>, vector<4x128xf32>, vector<16x128xf32> -> vector<16x128xf32>
    %11 = arith.addf %5, %10 : vector<16x128xf32>
    %12 = vector.extract_strided_slice %0 {offsets = [0, 2, 0], sizes = [1, 16, 4], strides = [1, 1, 1]} : vector<1x18x4xf32> to vector<1x16x4xf32>
    %13 = vector.shape_cast %12 : vector<1x16x4xf32> to vector<16x4xf32>
    %c2 = arith.constant 2 : index
    %c0_8 = arith.constant 0 : index
    %c0_9 = arith.constant 0 : index
    %14 = vector.load %arg2[%c2, %c0_8, %c0_9] : memref<3x4x128xf32, #tpu.memory_space<vmem>>, vector<1x4x128xf32>
    %15 = vector.shape_cast %14 : vector<1x4x128xf32> to vector<4x128xf32>
    %cst_10 = arith.constant dense<0.000000e+00> : vector<16x128xf32>
    %16 = tpu.matmul %13, %15, %cst_10 {dimension_numbers = #tpu.dot_dimension_numbers<[1], [0], [0], [1], [0, 0, 1, 1], [], []>} : vector<16x4xf32>, vector<4x128xf32>, vector<16x128xf32> -> vector<16x128xf32>
    %17 = arith.addf %11, %16 : vector<16x128xf32>
    %c0_11 = arith.constant 0 : index
    %c0_12 = arith.constant 0 : index
    %18 = vector.load %arg3[%c0_11, %c0_12] : memref<3x128xf32, #tpu.memory_space<vmem>>, vector<1x128xf32>
    %19 = vector.shape_cast %18 : vector<1x128xf32> to vector<128xf32>
    %20 = vector.shape_cast %19 : vector<128xf32> to vector<1x128xf32>
    %21 = vector.broadcast %20 : vector<1x128xf32> to vector<16x128xf32>
    %22 = arith.addf %17, %21 : vector<16x128xf32>
    %23 = vector.shape_cast %22 : vector<16x128xf32> to vector<1x16x128xf32>
    %cst_13 = arith.constant dense<0.000000e+00> : vector<1x16xf32>
    %24 = vector.multi_reduction <add>, %23, %cst_13 [2] : vector<1x16x128xf32> to vector<1x16xf32>
    %25 = vector.shape_cast %24 : vector<1x16xf32> to vector<1x16x1xf32>
    %cst_14 = arith.constant dense<0.000000e+00> : vector<1x1xf32>
    %26 = vector.multi_reduction <add>, %25, %cst_14 [1] : vector<1x16x1xf32> to vector<1x1xf32>
    %27 = vector.shape_cast %26 : vector<1x1xf32> to vector<1x1x1xf32>
    %cst_15 = arith.constant 7.812500e-03 : f32
    %28 = vector.broadcast %cst_15 : f32 to vector<1x1x1xf32>
    %29 = arith.mulf %27, %28 : vector<1x1x1xf32>
    %30 = tpu.iota {dimensions = array<i32: 2>} : vector<1x1x128xi32>
    %c8_i32 = arith.constant 8 : i32
    %31 = vector.broadcast %c8_i32 : i32 to vector<1x1x128xi32>
    %32 = arith.cmpi slt, %30, %31 : vector<1x1x128xi32>
    %33 = vector.broadcast %29 : vector<1x1x1xf32> to vector<1x16x128xf32>
    %34 = arith.subf %23, %33 : vector<1x16x128xf32>
    %cst_16 = arith.constant 0.000000e+00 : f32
    %35 = vector.shape_cast %32 : vector<1x1x128xi1> to vector<1x1x128xi1>
    %36 = vector.broadcast %35 : vector<1x1x128xi1> to vector<1x16x128xi1>
    %37 = vector.broadcast %cst_16 : f32 to vector<1x16x128xf32>
    %38 = arith.select %36, %34, %37 : vector<1x16x128xi1>, vector<1x16x128xf32>
    %39 = arith.mulf %38, %38 : vector<1x16x128xf32>
    %cst_17 = arith.constant dense<0.000000e+00> : vector<1x16xf32>
    %40 = vector.multi_reduction <add>, %39, %cst_17 [2] : vector<1x16x128xf32> to vector<1x16xf32>
    %41 = vector.shape_cast %40 : vector<1x16xf32> to vector<1x16x1xf32>
    %cst_18 = arith.constant dense<0.000000e+00> : vector<1x1xf32>
    %42 = vector.multi_reduction <add>, %41, %cst_18 [1] : vector<1x16x1xf32> to vector<1x1xf32>
    %43 = vector.shape_cast %42 : vector<1x1xf32> to vector<1x1x1xf32>
    %cst_19 = arith.constant 7.812500e-03 : f32
    %44 = vector.broadcast %cst_19 : f32 to vector<1x1x1xf32>
    %45 = arith.mulf %43, %44 : vector<1x1x1xf32>
    %cst_20 = arith.constant 9.99999974E-6 : f32
    %46 = vector.broadcast %cst_20 : f32 to vector<1x1x1xf32>
    %47 = arith.addf %45, %46 : vector<1x1x1xf32>
    %48 = math.rsqrt %47 : vector<1x1x1xf32>
    %c1_21 = arith.constant 1 : index
    %c0_22 = arith.constant 0 : index
    %49 = vector.load %arg3[%c1_21, %c0_22] : memref<3x128xf32, #tpu.memory_space<vmem>>, vector<1x128xf32>
    %50 = vector.shape_cast %49 : vector<1x128xf32> to vector<128xf32>
    %51 = vector.shape_cast %50 : vector<128xf32> to vector<1x1x128xf32>
    %c2_23 = arith.constant 2 : index
    %c0_24 = arith.constant 0 : index
    %52 = vector.load %arg3[%c2_23, %c0_24] : memref<3x128xf32, #tpu.memory_space<vmem>>, vector<1x128xf32>
    %53 = vector.shape_cast %52 : vector<1x128xf32> to vector<128xf32>
    %54 = vector.shape_cast %53 : vector<128xf32> to vector<1x1x128xf32>
    %55 = vector.broadcast %48 : vector<1x1x1xf32> to vector<1x1x128xf32>
    %56 = arith.mulf %55, %51 : vector<1x1x128xf32>
    %57 = vector.broadcast %29 : vector<1x1x1xf32> to vector<1x1x128xf32>
    %58 = arith.mulf %57, %56 : vector<1x1x128xf32>
    %59 = arith.subf %54, %58 : vector<1x1x128xf32>
    %60 = vector.broadcast %56 : vector<1x1x128xf32> to vector<1x16x128xf32>
    %61 = arith.mulf %23, %60 : vector<1x16x128xf32>
    %62 = vector.broadcast %59 : vector<1x1x128xf32> to vector<1x16x128xf32>
    %63 = arith.addf %61, %62 : vector<1x16x128xf32>
    %cst_25 = arith.constant 5.000000e-01 : f32
    %64 = vector.broadcast %cst_25 : f32 to vector<1x16x128xf32>
    %65 = arith.mulf %64, %63 : vector<1x16x128xf32>
    %cst_26 = arith.constant 0.707106769 : f32
    %66 = vector.broadcast %cst_26 : f32 to vector<1x16x128xf32>
    %67 = arith.mulf %63, %66 : vector<1x16x128xf32>
    %68 = math.erf %67 : vector<1x16x128xf32>
    %cst_27 = arith.constant 1.000000e+00 : f32
    %69 = vector.broadcast %cst_27 : f32 to vector<1x16x128xf32>
    %70 = arith.addf %69, %68 : vector<1x16x128xf32>
    %71 = arith.mulf %65, %70 : vector<1x16x128xf32>
    %c0_28 = arith.constant 0 : index
    %c0_29 = arith.constant 0 : index
    %c0_30 = arith.constant 0 : index
    %72 = vector.load %arg4[%c0_28, %c0_29, %c0_30] : memref<1x16x128xf32, #tpu.memory_space<vmem>>, vector<1x16x128xf32>
    tpu.vector_store %arg4[%c0_28, %c0_29, %c0_30], %71 {strides = array<i32>} : memref<1x16x128xf32, #tpu.memory_space<vmem>>, vector<1x16x128xf32>,
    return
  }
  func.func @transform_0(%arg0: i32) -> (i32, i32, i32) {
    %c0_i32 = arith.constant 0 : i32
    %c0_i32_0 = arith.constant 0 : i32
    %c0_i32_1 = arith.constant 0 : i32
    return %arg0, %c0_i32, %c0_i32_0 : i32, i32, i32
  }
  func.func @transform_1(%arg0: i32) -> (i32, i32, i32) {
    %c0_i32 = arith.constant 0 : i32
    %c0_i32_0 = arith.constant 0 : i32
    %c0_i32_1 = arith.constant 0 : i32
    %c0_i32_2 = arith.constant 0 : i32
    return %c0_i32, %c0_i32_0, %c0_i32_1 : i32, i32, i32
  }
  func.func @transform_2(%arg0: i32) -> (i32, i32) {
    %c0_i32 = arith.constant 0 : i32
    %c0_i32_0 = arith.constant 0 : i32
    %c0_i32_1 = arith.constant 0 : i32
    return %c0_i32, %c0_i32_0 : i32, i32
  }
  func.func @transform_3(%arg0: i32) -> (i32, i32, i32) {
    %c0_i32 = arith.constant 0 : i32
    %c0_i32_0 = arith.constant 0 : i32
    %c0_i32_1 = arith.constant 0 : i32
    return %arg0, %c0_i32, %c0_i32_0 : i32, i32, i32
  }
}

</mosaic_0001>

<bundles_post_ra>
// kernel: tpu_custom_call.1
= control target key start
LH: loop header
LB: loop body
LE: loop exit
PB: predicated region body
PF: predicated region fallthrough
CT: control target
= control target key end

     0   :  { %8 = vsyncpa [#allocation3], 0  ;;  %s904_s0 = inlined_call_operand.vmem [shape: f32[2,18,4], index: 0, kind: input, shape index: {}]   ;;  %s905_s1 = inlined_call_operand.vmem [shape: f32[3,4,128], index: 1, kind: input, shape index: {}]   ;;  %s906_s2 = inlined_call_operand.vmem [shape: f32[3,128], index: 2, kind: input, shape index: {}]   ;;  %s907_s3 = inlined_call_operand.hbm [shape: f32[2,16,128], index: 3, kind: output, shape index: {}]  }
   0x1   :  { %10 = vsyncpa [#allocation3 + $0x1], 0  ;;  %s772_s12 = smov 0   ;;  %s774_s13 = smov 0  }
   0x2   :  { %s776_s14 = smov 0   ;;  %s778_s15 = smov 0  }
   0x3 LB: > { %s793_s16 = sadd.s32 4294967295, %s747_s15   ;;  %s591_s17 = sadd.s32 4294967294, %s747_s15   ;;  %s747_s15 = sphi %s778_s15, %s913_s15   ;;  %s743_s14 = sphi %s776_s14, %s912_s14   ;;  %s739_s13 = sphi %s774_s13, %s911_s13   ;;  %s735_s12 = sphi %s772_s12, %s910_s12  }
   0x4   : > { %s797_s18 = sadd.s32 1, %s747_s15   ;;  %s91_s19 = sadd.s32 1, %s743_s14 }
   0x5   : > { %s88_s20 = ssub.s32 %s747_s15, %s797_s18  ;;  %p101_p0 = scmp.ne.s32.totalorder %s743_s14, %s739_s13 }
   0x6   : > { %p89_p1 = scmp.eq.s32.totalorder %s88_s20, 0  ;;  %p102_p2 = scmp.eq.s32.totalorder %s793_s16, 1 }
   0x7   : > { %p107_p3 = scmp.ne.s32.totalorder %s739_s13, %s735_s12  ;;  %p108_p4 = scmp.eq.s32.totalorder %s591_s17, 1 }
   0x8   : > { %s808_s21 = scalar_select %p89_p1, %s743_s14, %s91_s19  }
   0x9   : > { %p810_p5 = por %p102_p2, %p101_p0  ;;  %p814_p6 = por %p108_p4, %p107_p3 }
   0xa   : > { %p594_p7 = scmp.ge.s32.totalorder %s747_s15, 1  ;;  %p140_p8 = scmp.lt.s32.totalorder %s747_s15, 3 }
   0xc   : > { %p141_p9 = pnand %p594_p7, %p140_p8 }
   0xd   : > { %p164_p10 = scmp.lt.s32.totalorder (!%p141_p9), %s793_s16, 1  ;;  %s161_s20 = sand.u32 (!%p141_p9), 1, %s739_s13  }
   0xe   : > { %144 = sbr.rel (%p141_p9) target bundleno = 614 (0x266), region = 32  ;;  %s595_s24 = sshll.u32 (!%p141_p9), %s161_s20, 4 }
   0xf   : > { %s614_s25 = sshll.u32 (!%p141_p9), %s793_s16, 8  ;;  %s163_s26 = scalar_lea.vmem (!%p141_p9), [#allocation2], %s595_s24 }
  0x10   : > { %s529_s27 = sshll.u32 (!%p141_p9), %s163_s26, 4  ;;  %s749_s5 = smov (!%p141_p9), [#allocation2]   ;;  %s862_s27 = int_to_ptr.vmem [resolvable:$true] %s529_s27 }
  0x11   : > { %s691_s6 = sshll.u32 (!%p141_p9), %s749_s5, 4  ;;  %s692_s6 = int_to_ptr.vmem [resolvable:$false] %s691_s6 }
  0x12   : > { %p694_p0 = scmp.lt.s32.totalorder (!%p141_p9), %s862_s27, %s692_s6 }
  0x13   : > { %v597_v0 = vld [vmem:[%s905_s1 + $0x4] sm:$0xf]  ;;  %vm189_vm0 = vcmask 1043456   ;;  %v172_v1 = vld [vmem:[%s905_s1] sm:$0xf]  ;;  %s165_s30 = scalar_select %p164_p10, %s793_s16, 1  ;;  %v461_v35 = vlaneseq }
  0x14   : > { %624 = vmatprep.subr.msk.mxu0 %vm189_vm0, %v597_v0  ;;  %629 = vmatprep.subr.msk.mxu1 %vm189_vm0, %v172_v1  ;;  %v604_v2 = vld [vmem:[%s905_s1 + $0x8] sm:$0xf]  ;;  %vm184_vm1 = vcmask 31744   ;;  %vm178_vm2 = vcmask 1046528   ;;  %vm352_vm3 = vcmask 1045504   ;;  %s864_s16 = scalar_lea.sflag [#allocation3], %s161_s20 }
  0x15   : > { %625 = vmatpush3.msk.msra.mxu0 %vm189_vm0, %v597_v0  ;;  %630 = vmatpush3.msk.msra.mxu1 %vm189_vm0, %v172_v1  ;;  %s639_s4 = smul.u32 24, %s165_s30  ;;  %v608_v25 = vld [vmem:[%s906_s2] ss:$0 sm:$0xff]  ;;  %v462_v38 = vand.u32 127, %v461_v35  ;;  %v492_v58 = vshrl.u32 %v461_v35, 7  ;;  %s860_s30 = scalar_lea.hbm %s907_s3, %s614_s25 }
  0x16   : > { %634 = vmatprep.subr.msk.mxu0 %vm189_vm0, %v604_v2  ;;  %v486_v59 = vld [vmem:[%s906_s2 + $0x1] sm:$0x1]  ;;  %v487_v63 = vld [vmem:[%s906_s2 + $0x2] sm:$0x1] }
  0x17   : > { %s168_s7 = scalar_lea.vmem %s904_s0, %s639_s4  ;;  %vm463_vm4 = vcmp.lt.s32.totalorder %v462_v38, 8  ;;  %v493_v60 = vsub.s32 0, %v492_v58  ;;  %s687_s4 = scalar_lea.vmem %s862_s27, 256 }
  0x18   : > { %v169_v3 = vld [vmem:[%s168_s7] sm:$0xff]  ;;  %v170_v4 = vld [vmem:[%s168_s7 + $0x8] sm:$0xff]  ;;  %v171_v5 = vld [vmem:[%s168_s7 + $0x10] sm:$0x3]  ;;  %p688_p11 = scmp.ne.s32.totalorder %s862_s27, %s687_s4  ;;  %s693_s7 = scalar_lea.vmem %s692_s6, 512 }
  0x19   : > { %v179_v6 = vrot.slane %v169_v3, 1  ;;  %v180_v7 = vrot.slane %v170_v4, 1  ;;  %631 = vmatprep.mubr.msk.f32.mxu1 %vm184_vm1, %v169_v3  ;;  %v182_v8 = vrot.slane %v171_v5, 1  ;;  %v356_v9 = vrot.slane %v171_v5, 2  ;;  %p695_p1 = scmp.lt.s32.totalorder %s693_s7, %s687_s4 }
  0x1a   : > { %632 = vmatmul.mubr.msk.f32.vlgmr.msra.gmra.mxu1 %vm184_vm1, %v170_v4  ;;  %v353_v10 = vrot.slane %v169_v3, 2  ;;  %v354_v11 = vrot.slane %v170_v4, 2  ;;  %p689_p12 = pnand %p688_p11, %p810_p5 }
  0x1b   : > { %v181_v12 = vsel %vm178_vm2, %v179_v6, %v180_v7  ;;  %v183_v13 = vsel %vm178_vm2, %v180_v7, %v182_v8  ;;  %p696_p2 = por %p695_p1, %p694_p0 }
  0x1c   : > { %626 = vmatprep.mubr.msk.f32.mxu0 %vm184_vm1, %v181_v12  ;;  %v355_v14 = vsel %vm352_vm3, %v353_v10, %v354_v11  ;;  %v357_v15 = vsel %vm352_vm3, %v354_v11, %v356_v9  ;;  %p690_p13 = pneg %p689_p12 }
  0x1d   : > { %627 = vmatmul.mubr.msk.f32.vlgmr.msra.gmra.mxu0 %vm184_vm1, %v183_v13 }
  0x1e   : > { %635 = vmatpush3.msk.msra.mxu0 %vm189_vm0, %v604_v2  ;;  %636 = vmatprep.mubr.msk.f32.mxu0 %vm184_vm1, %v355_v14  ;;  %p697_p3 = pnand %p696_p2, %p690_p13 }
  0x21   : > { %637 = vmatmul.mubr.msk.f32.vlgmr.msra.gmra.mxu0 %vm184_vm1, %v357_v15 }
  0xda   : > { %v633_v16 = vpop.f32.mrf.mxu1 }
  0xdc   : > { %v341_v19 = vpop.f32.mrf.mxu1 }
  0xdd   : > { %v628_v17 = vpop.f32.mrf.mxu0 }
  0xde   : > { %v347_v23 = vadd.f32 %v633_v16, %v628_v17 }
  0xdf   : > { %v259_v18 = vpop.f32.mrf.mxu0 }
  0xe0   : > { %v342_v21 = vadd.f32 %v341_v19, %v259_v18 }
  0xe1   : > { %v638_v20 = vpop.f32.mrf.mxu0 }
  0xe2   : > { %v441_v26 = vadd.f32 %v638_v20, %v347_v23 }
  0xe3   : > { %v431_v22 = vpop.f32.mrf.mxu0 }
  0xe4   : > { %v440_v24 = vadd.f32 %v431_v22, %v342_v21  ;;  %v448_v28 = vadd.f32 %v608_v25, %v441_v26 }
  0xe6   : > { %v447_v27 = vadd.f32 %v608_v25, %v440_v24 }
  0xe8   : > { %449 = vadd.xlane.f32.xlu0 %v447_v27 }
  0xec   : > { %451 = vadd.xlane.f32.xlu0 %v448_v28 }
 0x171   : > { %v450_v29 = vpop.xlane.xlu0 %449 }
 0x175   : > { %v452_v30 = vpop.xlane.xlu0 %451 }
 0x176   : > { %v453_v31 = vadd.f32 %v452_v30, %v450_v29 }
 0x178   : > { %v454_v32 = vrot.slane %v453_v31, 4 }
 0x17a   : > { %v455_v33 = vadd.f32 %v454_v32, %v453_v31 }
 0x17c   : > { %v456_v34 = vrot.slane %v455_v33, 2 }
 0x17e   : > { %v457_v36 = vadd.f32 %v456_v34, %v455_v33 }
 0x180   : > { %v458_v37 = vrot.slane %v457_v36, 1 }
 0x182   : > { %v459_v39 = vadd.f32 %v458_v37, %v457_v36 }
 0x184   : > { %v460_v40 = vmul.f32 0.0078125, %v459_v39 }
 0x186   : > { %v464_v41 = vsub.f32 %v447_v27, %v460_v40  ;;  %v465_v42 = vsub.f32 %v448_v28, %v460_v40 }
 0x188   : > { %v468_v43 = vsel %vm463_vm4, %v464_v41, 0.0  ;;  %v469_v45 = vsel %vm463_vm4, %v465_v42, 0.0 }
 0x189   : > { %v470_v44 = vmul.f32 %v468_v43, %v468_v43  ;;  %v471_v46 = vmul.f32 %v469_v45, %v469_v45 }
 0x18b   : > { %472 = vadd.xlane.f32.xlu1 %v470_v44 }
 0x18f   : > { %474 = vadd.xlane.f32.xlu1 %v471_v46 }
 0x214   : > { %v473_v47 = vpop.xlane.xlu1 %472 }
 0x218   : > { %v475_v48 = vpop.xlane.xlu1 %474 }
 0x219   : > { %v476_v49 = vadd.f32 %v475_v48, %v473_v47 }
 0x21b   : > { %v477_v50 = vrot.slane %v476_v49, 4 }
 0x21d   : > { %v478_v51 = vadd.f32 %v477_v50, %v476_v49 }
 0x21f   : > { %v479_v52 = vrot.slane %v478_v51, 2 }
 0x221   : > { %v480_v53 = vadd.f32 %v479_v52, %v478_v51 }
 0x223   : > { %v481_v54 = vrot.slane %v480_v53, 1 }
 0x225   : > { %v482_v55 = vadd.f32 %v481_v54, %v480_v53 }
 0x227   : > { %v483_v56 = vmul.f32 0.0078125, %v482_v55 }
 0x229   : > { %v484_v57 = vadd.f32 1e-05, %v483_v56 }
 0x22b   : > { %681 = vrsqrt.f32 %v484_v57 }
 0x238   : > { %v682_v61 = vpop.eup %681 }
 0x239   : > { %v488_v62 = vmul.f32 %v682_v61, %v486_v59 }
 0x23b   : > { %v489_v0 = vmul.f32 %v488_v62, %v460_v40  ;;  %v494_v1 = vrot.slane %v488_v62, %v493_v60 }
 0x23d   : > { %v490_v2 = vsub.f32 %v487_v63, %v489_v0  ;;  %v495_v3 = vmul.f32 %v494_v1, %v447_v27  ;;  %v496_v4 = vmul.f32 %v494_v1, %v448_v28 }
 0x23f   : > { %v500_v5 = vrot.slane %v490_v2, %v493_v60 }
 0x241   : > { %v501_v6 = vadd.f32 %v500_v5, %v495_v3  ;;  %v502_v7 = vadd.f32 %v500_v5, %v496_v4 }
 0x243   : > { %v505_v8 = vmul.f32 0.70710677, %v501_v6  ;;  %v506_v9 = vmul.f32 0.70710677, %v502_v7  ;;  %v503_v12 = vmul.f32 0.5, %v501_v6  ;;  %v504_v14 = vmul.f32 0.5, %v502_v7 }
 0x245   : > { %683 = verf.f32 %v505_v8 }
 0x246   : > { %685 = verf.f32 %v506_v9 }
 0x252   : > { %v684_v10 = vpop.eup %683 }
 0x253   : > { %v686_v11 = vpop.eup %685  ;;  %v509_v13 = vadd.f32 1.0, %v684_v10 }
 0x254   : > { %v510_v15 = vadd.f32 1.0, %v686_v11 }
 0x255   : > { %v511_v16 = vmul.f32 %v509_v13, %v503_v12 }
 0x256   : > { %v512_v17 = vmul.f32 %v510_v15, %v504_v14 }
 0x257   : > { %513 = vst [vmem:[%s163_s26] sm:$0xff] %v511_v16 }
 0x258   : > { %514 = vst [vmem:[%s163_s26 + $0x8] sm:$0xff] %v512_v17 }
 0x259   : > { %700 = shalt.err (!%p697_p3)
}
 0x25a   : > { %s701_s8 = scalar_lea.hbm %s860_s30, 256  ;;  %s705_s11 = scalar_lea.hbm %s907_s3, 512 }
 0x25b   : > { %p702_p4 = scmp.ne.s32.totalorder %s860_s30, %s701_s8  ;;  %p706_p9 = scmp.lt.s32.totalorder %s860_s30, %s907_s3 }
 0x25c   : > { %p707_p10 = scmp.lt.s32.totalorder %s705_s11, %s701_s8 }
 0x25d   : > { %p703_p7 = pnand %p702_p4, %p810_p5 }
 0x25e   : > { %p708_p11 = por %p707_p10, %p706_p9 }
 0x25f   : > { %p704_p8 = pneg %p703_p7 }
 0x261   : > { %p709_p12 = pnand %p708_p11, %p704_p8 }
 0x263   : > { %712 = shalt.err (!%p709_p12)
}
 0x264   : > { %s750_s20 = smov 128   ;;  %s751_s24 = smov 8  }
 0x265   : > { %640 = dma.vmem_to_hbm [thread:$0]  (%p810_p5), %s862_s27, 256, %s860_s30, %s864_s16, %s750_s20, %s750_s20, %s751_s24  }
 0x266 PF: > { %p646_p13 = scmp.ge.s32.totalorder %s747_s15, 2  ;;  %s544_s25 = sand.u32 1, %s735_s12  }
 0x267   : > { %s545_s26 = scalar_lea.sflag [#allocation3], %s544_s25 }
 0x268   : > { %p643_p0 = pnand %p646_p13, %p814_p6 }
 0x26a   : > { %p644_p1 = pneg %p643_p0 }
 0x26c   : > { %730 = dma.done.wait (%p644_p1), %s545_s26, 256  }
 0x26d   : > { %732 = vsyncadd (%p644_p1), %s545_s26, 4294967040  ;;  %p13_p2 = scmp.ge.s32.totalorder %s797_s18, 4   ;;  %s910_s12 = smov %s739_s13 }
 0x26e   : > { %s911_s13 = smov %s743_s14  ;;  %s912_s14 = smov %s808_s21 }
 0x26f   : > { %s913_s15 = smov %s797_s18  ;;  %15 = sbr.rel (!%p13_p2) target bundleno = 3 (0x3), region = 69 }
 0x274   :  { %550 = vsyncpa [#allocation3], 1 }
 0x275   :  { %552 = vsyncpa [#allocation3 + $0x1], 1 }

</bundles_post_ra>
